<compile_context>
chip_gen: v7x
topology: tpu7x:2x2x1
jax: 0.10.0
libtpu: 0.0.40
codegen_flags: <defaults>
</compile_context>

<pallas_src>
import functools

import jax
import jax.numpy as jnp
from jax.experimental import pallas as pl
from jax.experimental.pallas import tpu as pltpu

TEMPERATURE = 3.0
ALPHA = 0.7

_OUT_PAD_ROWS = 8        # each grid split writes a full (8, 128) f32 output block
_OUT_PAD_LANES = 128


@functools.lru_cache(maxsize=1)
def _tpu_config():
    """Returns (num_splits, tile_budget_bytes, vmem_limit_bytes_or_None)."""
    try:
        kind = jax.devices()[0].device_kind.lower()
    except Exception:  # pragma: no cover - defensive
        kind = ""
    if "v5 lite" in kind or "v5lite" in kind or "v5e" in kind or "v6" in kind:
        # Single TensorCore, 128 MiB VMEM: no parallel split, big row tiles.
        return 1, 56 << 20, 100 << 20
    if "7" in kind:
        # Two TensorCores per chip, 64 MiB VMEM per core: split rows across TCs.
        return 2, 26 << 20, 48 << 20
    if "v4" in kind or "v5p" in kind or "v5" in kind:
        # Megacore parts: keep the 2-way parallel split, conservative VMEM.
        return 2, 12 << 20, None
    return 1, 12 << 20, None


def _pick_tile_rows(n, v, itemsize, budget):
    """Largest sublane-aligned row tile fitting the per-generation VMEM budget."""
    sub = max(8, 32 // max(itemsize, 1))        # f32 -> 8, bf16 -> 16, int8/fp8 -> 32
    # 2 logits inputs x 2 pipeline buffers + ~5 live f32 full-width temps + picked.
    per_row = v * (4 * itemsize + 5 * 4) + 8
    tile = budget // max(per_row, 1)
    tile = (tile // sub) * sub
    tile = max(sub, min(1024, tile))
    n_ceil = ((n + sub - 1) // sub) * sub
    return int(min(tile, max(sub, n_ceil)))


def _loss_kernel(s_ref, t_ref, p_ref, kl_ref, ce_ref, *,
                 inv_temp, pow_int, n_rows, n_tiles, tile_rows,
                 tiles_per_split, gate_tiles, ragged):
    c = pl.program_id(0)          # TensorCore split (parallel axis)
    j = pl.program_id(1)          # row-tile index within the split (reduction axis)

    @pl.when(j == 0)
    def _():
        kl_ref[...] = jnp.zeros_like(kl_ref)
        ce_ref[...] = jnp.zeros_like(ce_ref)

    tile_idx = c * tiles_per_split + j

    def compute():
        s = s_ref[...].astype(jnp.float32)        # (TR, V) student logits
        t = t_ref[...].astype(jnp.float32)        # (TR, V) teacher logits
        picked = p_ref[...]                       # (TR, 1) gathered student logit at label

        # ---- student stats: tempered exp shared between the KL and CE paths ----
        s_max = jnp.max(s, axis=-1, keepdims=True)
        ds = s - s_max
        st_exp = jnp.exp(ds * inv_temp)                        # exp(s/T - max(s)/T)
        st_sum = jnp.sum(st_exp, axis=-1, keepdims=True)
        st_logz = jnp.log(st_sum) + s_max * inv_temp           # logsumexp(s / T)

        # ---- teacher stats ----
        t_max = jnp.max(t, axis=-1, keepdims=True)
        tt_exp = jnp.exp((t - t_max) * inv_temp)
        tt_sum = jnp.sum(tt_exp, axis=-1, keepdims=True)
        tt_logz = jnp.log(tt_sum) + t_max * inv_temp           # logsumexp(t / T)

        # KL(teacher || student) per row, with 1/tt_sum and 1/T factored to row level:
        #   sum_v p_t (logp_t - logp_s)
        #     = inv_temp * sum_v e_t (t - s) / tt_sum + (st_logz - tt_logz)
        # Underflowed tt_exp entries contribute exactly 0, so no p_t > 0 guard needed.
        kl_inner = jnp.sum(tt_exp * (t - s), axis=-1, keepdims=True)
        kl_row = kl_inner * (inv_temp / tt_sum) + (st_logz - tt_logz)   # (TR, 1)

        # ---- cross entropy on unscaled student logits ----
        # For small integer T, exp(s - s_max) == st_exp**T: a couple of VPU
        # multiplies instead of a third full-width EUP exp pass.
        if pow_int is not None:
            s_exp = st_exp
            for _ in range(pow_int - 1):
                s_exp = s_exp * st_exp
        else:
            s_exp = jnp.exp(ds)
        s_lse = jnp.log(jnp.sum(s_exp, axis=-1, keepdims=True)) + s_max
        ce_row = s_lse - picked                                          # (TR, 1)

        if ragged:
            # Ragged tail: zero invalid rows with jnp.where (not multiplication)
            # so garbage NaN/Inf in out-of-range rows is killed. Cheap: (TR, 1).
            row_ids = tile_idx * tile_rows + jax.lax.broadcasted_iota(
                jnp.int32, (tile_rows, 1), 0)
            valid = row_ids < n_rows
            kl_row = jnp.where(valid, kl_row, 0.0)
            ce_row = jnp.where(valid, ce_row, 0.0)

        # Broadcast-accumulate the tile's scalar partial over the whole (8, 128)
        # block; the wrapper reads element [0, 0] of each split's block.
        kl_ref[...] = kl_ref[...] + jnp.sum(kl_row)
        ce_ref[...] = ce_ref[...] + jnp.sum(ce_row)

    if gate_tiles:
        # Clamped duplicate tiles (num_splits overhang): skip the compute
        # entirely instead of compute-then-mask. The DMA re-read is still paid.
        pl.when(tile_idx < n_tiles)(compute)
    else:
        compute()


def _partial_sums(s2, t2, p2, temp, tile_rows, num_splits, tile_budget, vmem_limit):
    n, v = s2.shape
    if tile_rows is None:
        tile_rows = _pick_tile_rows(n, v, s2.dtype.itemsize, tile_budget)
    n_tiles = pl.cdiv(n, tile_rows)
    num_splits = max(1, min(int(num_splits), n_tiles))
    tiles_per_split = pl.cdiv(n_tiles, num_splits)
    gate_tiles = num_splits * tiles_per_split > n_tiles
    ragged = (n % tile_rows) != 0

    tf = float(temp)
    pow_int = int(tf) if (tf > 0 and tf == int(tf) and 1 <= int(tf) <= 8) else None

    def in_map(c, j):
        # Clamp so overhang tiles re-read the last real block; those tiles are
        # skipped in-kernel via pl.when (gate_tiles) / masked if ragged.
        return (jnp.minimum(c * tiles_per_split + j, n_tiles - 1), 0)

    kernel = functools.partial(
        _loss_kernel,
        inv_temp=1.0 / tf,
        pow_int=pow_int,
        n_rows=n,
        n_tiles=n_tiles,
        tile_rows=tile_rows,
        tiles_per_split=tiles_per_split,
        gate_tiles=gate_tiles,
        ragged=ragged,
    )

    n_exp = 2 if pow_int is not None else 3
    cost = pl.CostEstimate(
        flops=int(12 * n * v),
        transcendentals=int(n_exp * n * v),
        bytes_accessed=int(2 * n * v * s2.dtype.itemsize + 8 * n),
    )

    out_rows = num_splits * _OUT_PAD_ROWS
    kl_out, ce_out = pl.pallas_call(
        kernel,
        grid=(num_splits, tiles_per_split),
        in_specs=[
            pl.BlockSpec((tile_rows, v), in_map),
            pl.BlockSpec((tile_rows, v), in_map),
            pl.BlockSpec((tile_rows, 1), in_map),
        ],
        out_specs=[
            pl.BlockSpec((_OUT_PAD_ROWS, _OUT_PAD_LANES), lambda c, j: (c, 0)),
            pl.BlockSpec((_OUT_PAD_ROWS, _OUT_PAD_LANES), lambda c, j: (c, 0)),
        ],
        out_shape=[
            jax.ShapeDtypeStruct((out_rows, _OUT_PAD_LANES), jnp.float32),
            jax.ShapeDtypeStruct((out_rows, _OUT_PAD_LANES), jnp.float32),
        ],
        compiler_params=pltpu.CompilerParams(
            dimension_semantics=("parallel", "arbitrary"),
            vmem_limit_bytes=vmem_limit,
        ),
        cost_estimate=cost,
    )(s2, t2, p2)

    kl_sum = jnp.sum(kl_out[::_OUT_PAD_ROWS, 0])
    ce_sum = jnp.sum(ce_out[::_OUT_PAD_ROWS, 0])
    return kl_sum, ce_sum


@functools.partial(
    jax.jit, static_argnames=("temperature", "alpha", "tile_rows", "num_splits"))
def distillation_loss(student_logits, teacher_logits, labels,
                      temperature=TEMPERATURE, alpha=ALPHA,
                      tile_rows=None, num_splits=None):
    """Matches DistillationLoss.forward. Callers should pass logits in their
    native dtype (e.g. bf16) — the kernel streams native dtype from HBM and
    casts to f32 in VMEM; adding a wrapper cast would only add HBM traffic."""
    sv = student_logits.shape[-1]
    tv = teacher_logits.shape[-1]
    if sv != tv:
        mv = min(sv, tv)
        student_logits = student_logits[..., :mv]
        teacher_logits = teacher_logits[..., :mv]
        labels = jnp.minimum(labels, mv - 1)          # == labels.clamp(max=mv-1)

    v = student_logits.shape[-1]
    # PyTorch kl_div(reduction='batchmean') on the unflattened [B, S, V] input
    # divides by input.size(0) == B.
    batchmean_div = student_logits.shape[0]
    s2 = student_logits.reshape(-1, v)
    t2 = teacher_logits.reshape(-1, v)
    l2 = labels.reshape(-1, 1).astype(jnp.int32)
    n = s2.shape[0]

    # Label gather hoisted out of the hot loop: O(N) rows touched vs the
    # 2*N*V streaming traffic, removes the per-tile iota/compare/select.
    picked = jnp.take_along_axis(s2, l2, axis=-1).astype(jnp.float32)

    cfg_splits, tile_budget, vmem_limit = _tpu_config()
    if num_splits is None:
        num_splits = cfg_splits

    # TODO(synk): PyTorch CrossEntropyLoss ignore_index (-100) tokens are not skipped here.
    kl_sum, ce_sum = _partial_sums(
        s2, t2, picked, float(temperature), tile_rows, num_splits,
        tile_budget, vmem_limit)

    distill = (kl_sum / batchmean_div) * (temperature ** 2)
    student = ce_sum / n                              # CrossEntropyLoss default mean
    total = alpha * distill + (1.0 - alpha) * student
    return total, distill, student


def _reference(student_logits, teacher_logits, labels,
               temperature=TEMPERATURE, alpha=ALPHA):
    sv, tv = student_logits.shape[-1], teacher_logits.shape[-1]
    if sv != tv:
        mv = min(sv, tv)
        student_logits = student_logits[..., :mv]
        teacher_logits = teacher_logits[..., :mv]
        labels = jnp.minimum(labels, mv - 1)
    sp = jax.nn.log_softmax(student_logits / temperature, axis=-1)
    tp = jax.nn.softmax(teacher_logits / temperature, axis=-1)
    tlogp = jax.nn.log_softmax(teacher_logits / temperature, axis=-1)
    kl = jnp.sum(tp * (tlogp - sp)) / student_logits.shape[0]
    distill = kl * temperature ** 2
    v = student_logits.shape[-1]
    s2 = student_logits.reshape(-1, v)
    l2 = labels.reshape(-1)
    lse = jax.nn.logsumexp(s2, axis=-1)
    picked = jnp.take_along_axis(s2, l2[:, None], axis=-1)[:, 0]
    student = jnp.mean(lse - picked)
    return alpha * distill + (1 - alpha) * student, distill, student


if __name__ == "__main__":
    key = jax.random.PRNGKey(0)
    k1, k2, k3 = jax.random.split(key, 3)

    # Case 1: mismatched vocab sizes (truncation path), auto tile/splits,
    # integer temperature -> exercises the st_exp**T (2-exp) path.
    B, S = 2, 8
    V_STUDENT, V_TEACHER = 160, 192
    student_logits = jax.random.normal(k1, (B, S, V_STUDENT), dtype=jnp.float32)
    teacher_logits = jax.random.normal(k2, (B, S, V_TEACHER), dtype=jnp.float32)
    labels = jax.random.randint(k3, (B, S), 0, V_TEACHER, dtype=jnp.int32)

    out1 = distillation_loss(student_logits, teacher_logits, labels)
    jax.block_until_ready(out1)
    ref1 = _reference(student_logits, teacher_logits, labels)
    for got, want in zip(out1, ref1):
        assert jnp.allclose(got, want, atol=1e-4, rtol=1e-4), (got, want)

    # Case 2: ragged row count + forced 4-way split with tiny tiles -> exercises
    # the in-kernel row mask, the pl.when gating of clamped duplicate tiles, and
    # the multi-split partial-sum path.
    k4, k5, k6 = jax.random.split(jax.random.PRNGKey(1), 3)
    B2, S2, V2 = 2, 23, 130
    sl2 = jax.random.normal(k4, (B2, S2, V2), dtype=jnp.float32)
    tl2 = jax.random.normal(k5, (B2, S2, V2), dtype=jnp.float32)
    lb2 = jax.random.randint(k6, (B2, S2), 0, V2, dtype=jnp.int32)

    out2 = distillation_loss(sl2, tl2, lb2, tile_rows=8, num_splits=4)
    jax.block_until_ready(out2)
    ref2 = _reference(sl2, tl2, lb2)
    for got, want in zip(out2, ref2):
        assert jnp.allclose(got, want, atol=1e-4, rtol=1e-4), (got, want)

    # Case 3: non-integer temperature -> exercises the third-exp fallback path.
    out3 = distillation_loss(student_logits, teacher_logits, labels, temperature=2.5)
    jax.block_until_ready(out3)
    ref3 = _reference(student_logits, teacher_logits, labels, temperature=2.5)
    for got, want in zip(out3, ref3):
        assert jnp.allclose(got, want, atol=1e-4, rtol=1e-4), (got, want)

    print("KERNEL_OK")
</pallas_src>

<mosaic_0001>
module attributes {stable_mosaic.version = 11 : i64} {
  func.func @_loss_kernel(%arg0: i32, %arg1: i32, %arg2: memref<16x160xf32, #tpu.memory_space<vmem>>, %arg3: memref<16x160xf32, #tpu.memory_space<vmem>>, %arg4: memref<16x1xf32, #tpu.memory_space<vmem>>, %arg5: memref<8x128xf32, #tpu.memory_space<vmem>>, %arg6: memref<8x128xf32, #tpu.memory_space<vmem>>) attributes {dimension_semantics = [#tpu.dimension_semantics<parallel>, #tpu.dimension_semantics<arbitrary>], iteration_bounds = array<i64: 1, 1>, scalar_prefetch = 0 : i64, scratch_operands = 0 : i64, tpu.core_type = #tpu.core_type<tc>, window_params = [{transform_indices = @transform_0, window_bounds = array<i64: 16, 160>}, {transform_indices = @transform_1, window_bounds = array<i64: 16, 160>}, {transform_indices = @transform_2, window_bounds = array<i64: 16, 1>}, {transform_indices = @transform_3, window_bounds = array<i64: 8, 128>}, {transform_indices = @transform_4, window_bounds = array<i64: 8, 128>}]} {
    %c0_i32 = arith.constant 0 : i32
    %0 = arith.cmpi eq, %arg1, %c0_i32 : i32
    %1 = arith.extui %0 : i1 to i32
    %c0_i32_0 = arith.constant 0 : i32
    %2 = arith.cmpi ne, %1, %c0_i32_0 : i32
    scf.if %2 {
      %cst_26 = arith.constant 0.000000e+00 : f32
      %64 = vector.broadcast %cst_26 : f32 to vector<8x128xf32>
      %c0_27 = arith.constant 0 : index
      %c0_28 = arith.constant 0 : index
      %65 = vector.load %arg5[%c0_27, %c0_28] : memref<8x128xf32, #tpu.memory_space<vmem>>, vector<8x128xf32>
      tpu.vector_store %arg5[%c0_27, %c0_28], %64 {strides = array<i32>} : memref<8x128xf32, #tpu.memory_space<vmem>>, vector<8x128xf32>,
      %cst_29 = arith.constant 0.000000e+00 : f32
      %66 = vector.broadcast %cst_29 : f32 to vector<8x128xf32>
      %c0_30 = arith.constant 0 : index
      %c0_31 = arith.constant 0 : index
      %67 = vector.load %arg6[%c0_30, %c0_31] : memref<8x128xf32, #tpu.memory_space<vmem>>, vector<8x128xf32>
      tpu.vector_store %arg6[%c0_30, %c0_31], %66 {strides = array<i32>} : memref<8x128xf32, #tpu.memory_space<vmem>>, vector<8x128xf32>,
    } else {
    }
    %c0 = arith.constant 0 : index
    %c0_1 = arith.constant 0 : index
    %3 = vector.load %arg2[%c0, %c0_1] : memref<16x160xf32, #tpu.memory_space<vmem>>, vector<16x160xf32>
    %c0_2 = arith.constant 0 : index
    %c0_3 = arith.constant 0 : index
    %4 = vector.load %arg3[%c0_2, %c0_3] : memref<16x160xf32, #tpu.memory_space<vmem>>, vector<16x160xf32>
    %c0_4 = arith.constant 0 : index
    %c0_5 = arith.constant 0 : index
    %5 = vector.load %arg4[%c0_4, %c0_5] : memref<16x1xf32, #tpu.memory_space<vmem>>, vector<16x1xf32>
    %cst = arith.constant dense<0xFF800000> : vector<16xf32>
    %6 = vector.multi_reduction <maximumf>, %3, %cst [1] : vector<16x160xf32> to vector<16xf32>
    %7 = vector.shape_cast %6 : vector<16xf32> to vector<16x1xf32>
    %8 = vector.broadcast %7 : vector<16x1xf32> to vector<16x160xf32>
    %9 = arith.subf %3, %8 : vector<16x160xf32>
    %cst_6 = arith.constant 0.333333343 : f32
    %10 = vector.broadcast %cst_6 : f32 to vector<16x160xf32>
    %11 = arith.mulf %9, %10 : vector<16x160xf32>
    %12 = math.exp %11 : vector<16x160xf32>
    %cst_7 = arith.constant dense<0.000000e+00> : vector<16xf32>
    %13 = vector.multi_reduction <add>, %12, %cst_7 [1] : vector<16x160xf32> to vector<16xf32>
    %14 = vector.shape_cast %13 : vector<16xf32> to vector<16x1xf32>
    %15 = math.log %14 : vector<16x1xf32>
    %cst_8 = arith.constant 0.333333343 : f32
    %16 = vector.broadcast %cst_8 : f32 to vector<16x1xf32>
    %17 = arith.mulf %7, %16 : vector<16x1xf32>
    %18 = arith.addf %15, %17 : vector<16x1xf32>
    %cst_9 = arith.constant dense<0xFF800000> : vector<16xf32>
    %19 = vector.multi_reduction <maximumf>, %4, %cst_9 [1] : vector<16x160xf32> to vector<16xf32>
    %20 = vector.shape_cast %19 : vector<16xf32> to vector<16x1xf32>
    %21 = vector.broadcast %20 : vector<16x1xf32> to vector<16x160xf32>
    %22 = arith.subf %4, %21 : vector<16x160xf32>
    %cst_10 = arith.constant 0.333333343 : f32
    %23 = vector.broadcast %cst_10 : f32 to vector<16x160xf32>
    %24 = arith.mulf %22, %23 : vector<16x160xf32>
    %25 = math.exp %24 : vector<16x160xf32>
    %cst_11 = arith.constant dense<0.000000e+00> : vector<16xf32>
    %26 = vector.multi_reduction <add>, %25, %cst_11 [1] : vector<16x160xf32> to vector<16xf32>
    %27 = vector.shape_cast %26 : vector<16xf32> to vector<16x1xf32>
    %28 = math.log %27 : vector<16x1xf32>
    %cst_12 = arith.constant 0.333333343 : f32
    %29 = vector.broadcast %cst_12 : f32 to vector<16x1xf32>
    %30 = arith.mulf %20, %29 : vector<16x1xf32>
    %31 = arith.addf %28, %30 : vector<16x1xf32>
    %32 = arith.subf %4, %3 : vector<16x160xf32>
    %33 = arith.mulf %25, %32 : vector<16x160xf32>
    %cst_13 = arith.constant dense<0.000000e+00> : vector<16xf32>
    %34 = vector.multi_reduction <add>, %33, %cst_13 [1] : vector<16x160xf32> to vector<16xf32>
    %35 = vector.shape_cast %34 : vector<16xf32> to vector<16x1xf32>
    %cst_14 = arith.constant 0.333333343 : f32
    %36 = vector.broadcast %cst_14 : f32 to vector<16x1xf32>
    %37 = arith.divf %36, %27 : vector<16x1xf32>
    %38 = arith.mulf %35, %37 : vector<16x1xf32>
    %39 = arith.subf %18, %31 : vector<16x1xf32>
    %40 = arith.addf %38, %39 : vector<16x1xf32>
    %41 = arith.mulf %12, %12 : vector<16x160xf32>
    %42 = arith.mulf %41, %12 : vector<16x160xf32>
    %cst_15 = arith.constant dense<0.000000e+00> : vector<16xf32>
    %43 = vector.multi_reduction <add>, %42, %cst_15 [1] : vector<16x160xf32> to vector<16xf32>
    %44 = vector.shape_cast %43 : vector<16xf32> to vector<16x1xf32>
    %45 = math.log %44 : vector<16x1xf32>
    %46 = arith.addf %45, %7 : vector<16x1xf32>
    %47 = arith.subf %46, %5 : vector<16x1xf32>
    %c0_16 = arith.constant 0 : index
    %c0_17 = arith.constant 0 : index
    %48 = vector.load %arg5[%c0_16, %c0_17] : memref<8x128xf32, #tpu.memory_space<vmem>>, vector<8x128xf32>
    %49 = vector.shape_cast %40 : vector<16x1xf32> to vector<1x16x1xf32>
    %cst_18 = arith.constant dense<0.000000e+00> : vector<1xf32>
    %50 = vector.multi_reduction <add>, %49, %cst_18 [1, 2] : vector<1x16x1xf32> to vector<1xf32>
    %51 = vector.shape_cast %50 : vector<1xf32> to vector<1x1x1xf32>
    %52 = vector.extract %51[0, 0, 0] : f32 from vector<1x1x1xf32>
    %53 = vector.broadcast %52 : f32 to vector<8x128xf32>
    %54 = arith.addf %48, %53 : vector<8x128xf32>
    %c0_19 = arith.constant 0 : index
    %c0_20 = arith.constant 0 : index
    %55 = vector.load %arg5[%c0_19, %c0_20] : memref<8x128xf32, #tpu.memory_space<vmem>>, vector<8x128xf32>
    tpu.vector_store %arg5[%c0_19, %c0_20], %54 {strides = array<i32>} : memref<8x128xf32, #tpu.memory_space<vmem>>, vector<8x128xf32>,
    %c0_21 = arith.constant 0 : index
    %c0_22 = arith.constant 0 : index
    %56 = vector.load %arg6[%c0_21, %c0_22] : memref<8x128xf32, #tpu.memory_space<vmem>>, vector<8x128xf32>
    %57 = vector.shape_cast %47 : vector<16x1xf32> to vector<1x16x1xf32>
    %cst_23 = arith.constant dense<0.000000e+00> : vector<1xf32>
    %58 = vector.multi_reduction <add>, %57, %cst_23 [1, 2] : vector<1x16x1xf32> to vector<1xf32>
    %59 = vector.shape_cast %58 : vector<1xf32> to vector<1x1x1xf32>
    %60 = vector.extract %59[0, 0, 0] : f32 from vector<1x1x1xf32>
    %61 = vector.broadcast %60 : f32 to vector<8x128xf32>
    %62 = arith.addf %56, %61 : vector<8x128xf32>
    %c0_24 = arith.constant 0 : index
    %c0_25 = arith.constant 0 : index
    %63 = vector.load %arg6[%c0_24, %c0_25] : memref<8x128xf32, #tpu.memory_space<vmem>>, vector<8x128xf32>
    tpu.vector_store %arg6[%c0_24, %c0_25], %62 {strides = array<i32>} : memref<8x128xf32, #tpu.memory_space<vmem>>, vector<8x128xf32>,
    return
  }
  func.func @transform_0(%arg0: i32, %arg1: i32) -> (i32, i32) {
    %c1_i32 = arith.constant 1 : i32
    %0 = arith.muli %arg0, %c1_i32 : i32
    %1 = arith.addi %0, %arg1 : i32
    %c0_i32 = arith.constant 0 : i32
    %2 = arith.minsi %1, %c0_i32 : i32
    %c0_i32_0 = arith.constant 0 : i32
    %c0_i32_1 = arith.constant 0 : i32
    return %2, %c0_i32_0 : i32, i32
  }
  func.func @transform_1(%arg0: i32, %arg1: i32) -> (i32, i32) {
    %c1_i32 = arith.constant 1 : i32
    %0 = arith.muli %arg0, %c1_i32 : i32
    %1 = arith.addi %0, %arg1 : i32
    %c0_i32 = arith.constant 0 : i32
    %2 = arith.minsi %1, %c0_i32 : i32
    %c0_i32_0 = arith.constant 0 : i32
    %c0_i32_1 = arith.constant 0 : i32
    return %2, %c0_i32_0 : i32, i32
  }
  func.func @transform_2(%arg0: i32, %arg1: i32) -> (i32, i32) {
    %c1_i32 = arith.constant 1 : i32
    %0 = arith.muli %arg0, %c1_i32 : i32
    %1 = arith.addi %0, %arg1 : i32
    %c0_i32 = arith.constant 0 : i32
    %2 = arith.minsi %1, %c0_i32 : i32
    %c0_i32_0 = arith.constant 0 : i32
    %c0_i32_1 = arith.constant 0 : i32
    return %2, %c0_i32_0 : i32, i32
  }
  func.func @transform_3(%arg0: i32, %arg1: i32) -> (i32, i32) {
    %c0_i32 = arith.constant 0 : i32
    %c0_i32_0 = arith.constant 0 : i32
    return %arg0, %c0_i32 : i32, i32
  }
  func.func @transform_4(%arg0: i32, %arg1: i32) -> (i32, i32) {
    %c0_i32 = arith.constant 0 : i32
    %c0_i32_0 = arith.constant 0 : i32
    return %arg0, %c0_i32 : i32, i32
  }
}

</mosaic_0001>

<bundles_post_ra>
// kernel: distillation_loss.1
= control target key start
LH: loop header
LB: loop body
LE: loop exit
PB: predicated region body
PF: predicated region fallthrough
CT: control target
= control target key end

     0   :  { %vm134_vm0 = vcmask 261120   ;;  %vm266_vm1 = vcmask 7168   ;;  %s496_s0 = inlined_call_operand.vmem [shape: f32[16,160], index: 0, kind: input, shape index: {}]   ;;  %s497_s1 = inlined_call_operand.vmem [shape: f32[16,160], index: 1, kind: input, shape index: {}]   ;;  %s498_s2 = inlined_call_operand.vmem [shape: f32[16,1], index: 2, kind: input, shape index: {}]   ;;  %s499_s3 = inlined_call_operand.vmem [shape: f32[8,128], index: 3, kind: output, shape index: {0}]   ;;  %s500_s4 = inlined_call_operand.vmem [shape: f32[8,128], index: 4, kind: output, shape index: {1}]  }
   0x1   :  { %v389_v0 = vld [vmem:[%s496_s0] sm:$0xff]  ;;  %v394_v1 = vld [vmem:[%s496_s0 + $0x8] sm:$0xff]  ;;  %v411_v5 = vld [vmem:[%s496_s0 + $0x10] sm:$0xff] }
   0x2   :  { %v399_v2 = vld [vmem:[%s497_s1] sm:$0xff]  ;;  %v135_v3 = vsel %vm134_vm0, %v394_v1, -inf  ;;  %v406_v4 = vld [vmem:[%s497_s1 + $0x8] sm:$0xff]  ;;  %v416_v6 = vld [vmem:[%s496_s0 + $0x18] sm:$0xff] }
   0x3   :  { %v136_v7 = vmax.f32 %v389_v0, %v135_v3  ;;  %v175_v8 = vsel %vm134_vm0, %v406_v4, -inf  ;;  %v139_v9 = vsel %vm134_vm0, %v416_v6, -inf  ;;  %v426_v10 = vld [vmem:[%s497_s1 + $0x10] sm:$0xff]  ;;  %v431_v11 = vld [vmem:[%s497_s1 + $0x18] sm:$0xff]  ;;  %v216_v53 = vsub.f32 %v406_v4, %v394_v1 }
   0x4   :  { %v176_v12 = vmax.f32 %v399_v2, %v175_v8  ;;  %v179_v13 = vsel %vm134_vm0, %v431_v11, -inf  ;;  %v140_v14 = vmax.f32 %v411_v5, %v139_v9  ;;  %v215_v59 = vsub.f32 %v399_v2, %v389_v0 }
   0x5   :  { %137 = vmax.xlane.f32.xlu0 %v136_v7  ;;  %v180_v15 = vmax.f32 %v426_v10, %v179_v13 }
   0x6   :  { %177 = vmax.xlane.f32.xlu1 %v176_v12 }
   0x9   :  { %141 = vmax.xlane.f32.xlu0 %v140_v14 }
   0xa   :  { %181 = vmax.xlane.f32.xlu1 %v180_v15  ;;  %v217_v15 = vsub.f32 %v426_v10, %v411_v5 }
  0x92   :  { %v438_v16 = vpop.xlane.xlu0 %137 }
  0x93   :  { %v143_v17 = vsub.f32 %v389_v0, %v438_v16  ;;  %v144_v18 = vsub.f32 %v394_v1, %v438_v16  ;;  %v444_v19 = vpop.xlane.xlu1 %177  ;;  %v218_v1 = vsub.f32 %v431_v11, %v416_v6 }
  0x94   :  { %v183_v20 = vsub.f32 %v399_v2, %v444_v19  ;;  %v184_v21 = vsub.f32 %v406_v4, %v444_v19 }
  0x95   :  { %v147_v22 = vmul.f32 0.33333334, %v143_v17  ;;  %v148_v23 = vmul.f32 0.33333334, %v144_v18 }
  0x96   :  { %v187_v24 = vmul.f32 0.33333334, %v183_v20  ;;  %v188_v25 = vmul.f32 0.33333334, %v184_v21  ;;  %v450_v26 = vpop.xlane.xlu0 %141 }
  0x97   :  { %v151_v27 = vmul.f32 1.442695, %v147_v22  ;;  %v153_v28 = vmul.f32 1.442695, %v148_v23  ;;  %v145_v29 = vsub.f32 %v411_v5, %v450_v26  ;;  %v146_v30 = vsub.f32 %v416_v6, %v450_v26  ;;  %v456_v31 = vpop.xlane.xlu1 %181 }
  0x98   :  { %v191_v32 = vmul.f32 1.442695, %v187_v24  ;;  %v193_v33 = vmul.f32 1.442695, %v188_v25  ;;  %v185_v34 = vsub.f32 %v426_v10, %v456_v31  ;;  %v186_v37 = vsub.f32 %v431_v11, %v456_v31 }
  0x99   :  { %329 = vpow2.f32 %v151_v27  ;;  %v149_v35 = vmul.f32 0.33333334, %v145_v29  ;;  %v150_v36 = vmul.f32 0.33333334, %v146_v30 }
  0x9a   :  { %331 = vpow2.f32 %v153_v28  ;;  %v189_v38 = vmul.f32 0.33333334, %v185_v34  ;;  %v190_v41 = vmul.f32 0.33333334, %v186_v37 }
  0x9b   :  { %333 = vpow2.f32 %v191_v32  ;;  %v155_v39 = vmul.f32 1.442695, %v149_v35  ;;  %v157_v40 = vmul.f32 1.442695, %v150_v36  ;;  %v171_v35 = vmul.f32 0.33333334, %v438_v16 }
  0x9c   :  { %335 = vpow2.f32 %v193_v33  ;;  %v195_v42 = vmul.f32 1.442695, %v189_v38  ;;  %v197_v43 = vmul.f32 1.442695, %v190_v41  ;;  %v211_v36 = vmul.f32 0.33333334, %v444_v19 }
  0x9d   :  { %337 = vpow2.f32 %v155_v39 }
  0x9e   :  { %339 = vpow2.f32 %v157_v40 }
  0x9f   :  { %341 = vpow2.f32 %v195_v42 }
  0xa0   :  { %343 = vpow2.f32 %v197_v43 }
  0xa3   :  { %v330_v44 = vpop.eup %329 }
  0xa4   :  { %v332_v45 = vpop.eup %331  ;;  %v241_v51 = vmul.f32 %v330_v44, %v330_v44 }
  0xa5   :  { %v334_v46 = vpop.eup %333  ;;  %v159_v47 = vsel %vm134_vm0, %v332_v45, 0.0  ;;  %v242_v48 = vmul.f32 %v332_v45, %v332_v45 }
  0xa6   :  { %v336_v49 = vpop.eup %335  ;;  %v160_v50 = vadd.f32 %v330_v44, %v159_v47  ;;  %v245_v3 = vmul.f32 %v330_v44, %v241_v51  ;;  %v219_v2 = vmul.f32 %v334_v46, %v215_v59  ;;  %v172_v44 = vmul.f32 0.33333334, %v450_v26 }
  0xa7   :  { %v338_v52 = vpop.eup %337  ;;  %v199_v54 = vsel %vm134_vm0, %v336_v49, 0.0  ;;  %v246_v55 = vmul.f32 %v332_v45, %v242_v48  ;;  %v220_v9 = vmul.f32 %v336_v49, %v216_v53  ;;  %v212_v45 = vmul.f32 0.33333334, %v456_v31 }
  0xa8   :  { %v340_v56 = vpop.eup %339  ;;  %161 = vadd.xlane.f32.xlu0 %v160_v50  ;;  %v200_v57 = vadd.f32 %v334_v46, %v199_v54  ;;  %v243_v7 = vmul.f32 %v338_v52, %v338_v52 }
  0xa9   :  { %v342_v58 = vpop.eup %341  ;;  %v163_v60 = vsel %vm134_vm0, %v340_v56, 0.0  ;;  %v244_v61 = vmul.f32 %v340_v56, %v340_v56  ;;  %v249_v4 = vsel %vm134_vm0, %v246_v55, 0.0  ;;  %v223_v17 = vsel %vm134_vm0, %v220_v9, 0.0 }
  0xaa   :  { %v344_v62 = vpop.eup %343  ;;  %v164_v63 = vadd.f32 %v338_v52, %v163_v60  ;;  %v250_v0 = vadd.f32 %v249_v4, %v245_v3  ;;  %v247_v14 = vmul.f32 %v338_v52, %v243_v7  ;;  %v224_v11 = vadd.f32 %v223_v17, %v219_v2 }
  0xab   :  { %v203_v8 = vsel %vm134_vm0, %v344_v62, 0.0  ;;  %v248_v12 = vmul.f32 %v340_v56, %v244_v61  ;;  %v222_v6 = vmul.f32 %v344_v62, %v218_v1  ;;  %v221_v21 = vmul.f32 %v342_v58, %v217_v15  ;;  %v133_v61 = vld [vmem:[%s498_s2 + $0x8] sm:$0xff] }
  0xac   :  { %201 = vadd.xlane.f32.xlu0 %v200_v57  ;;  %165 = vadd.xlane.f32.xlu1 %v164_v63  ;;  %v204_v13 = vadd.f32 %v342_v58, %v203_v8  ;;  %v132_v57 = vld [vmem:[%s498_s2] sm:$0xff] }
  0xad   :  { %v253_v18 = vsel %vm134_vm0, %v248_v12, 0.0  ;;  %v227_v22 = vsel %vm134_vm0, %v222_v6, 0.0 }
  0xae   :  { %v254_v20 = vadd.f32 %v253_v18, %v247_v14  ;;  %v228_v23 = vadd.f32 %v227_v22, %v221_v21 }
  0xb0   :  { %251 = vadd.xlane.f32.xlu0 %v250_v0  ;;  %205 = vadd.xlane.f32.xlu1 %v204_v13 }
  0xb4   :  { %225 = vadd.xlane.f32.xlu0 %v224_v11  ;;  %255 = vadd.xlane.f32.xlu1 %v254_v20 }
  0xb8   :  { %229 = vadd.xlane.f32.xlu1 %v228_v23 }
 0x135   :  { %v162_v24 = vpop.xlane.xlu0 %161 }
 0x136   :  { %345 = vlog2.f32 %v162_v24 }
 0x139   :  { %v166_v25 = vpop.xlane.xlu1 %165  ;;  %v202_v5 = vpop.xlane.xlu0 %201 }
 0x13a   :  { %347 = vlog2.f32 %v166_v25 }
 0x13b   :  { %349 = vlog2.f32 %v202_v5 }
 0x13c   :  { %351 = vrcp.f32 %v202_v5 }
 0x13d   :  { %v206_v10 = vpop.xlane.xlu1 %205  ;;  %v252_v27 = vpop.xlane.xlu0 %251 }
 0x13e   :  { %353 = vlog2.f32 %v206_v10 }
 0x13f   :  { %355 = vrcp.f32 %v206_v10 }
 0x140   :  { %357 = vlog2.f32 %v252_v27  ;;  %v346_v28 = vpop.eup %345 }
 0x141   :  { %v256_v29 = vpop.xlane.xlu1 %255  ;;  %v168_v32 = vmul.f32 0.6931472, %v346_v28  ;;  %v226_v47 = vpop.xlane.xlu0 %225 }
 0x142   :  { %359 = vlog2.f32 %v256_v29 }
 0x143   :  { %v173_v41 = vadd.f32 %v171_v35, %v168_v32 }
 0x144   :  { %v348_v30 = vpop.eup %347 }
 0x145   :  { %v350_v33 = vpop.eup %349  ;;  %v170_v38 = vmul.f32 0.6931472, %v348_v30  ;;  %v230_v56 = vpop.xlane.xlu1 %229 }
 0x146   :  { %v352_v34 = vpop.eup %351  ;;  %v208_v37 = vmul.f32 0.6931472, %v350_v33 }
 0x147   :  { %v232_v39 = vmul.f32 0.33333334, %v352_v34  ;;  %v174_v52 = vadd.f32 %v172_v44, %v170_v38 }
 0x148   :  { %v354_v40 = vpop.eup %353  ;;  %v213_v42 = vadd.f32 %v211_v36, %v208_v37 }
 0x149   :  { %v356_v43 = vpop.eup %355  ;;  %v210_v46 = vmul.f32 0.6931472, %v354_v40  ;;  %v235_v50 = vmul.f32 %v232_v39, %v226_v47 }
 0x14a   :  { %v358_v48 = vpop.eup %357  ;;  %v237_v49 = vsub.f32 %v173_v41, %v213_v42  ;;  %v234_v51 = vmul.f32 0.33333334, %v356_v43 }
 0x14b   :  { %v258_v53 = vmul.f32 0.6931472, %v358_v48  ;;  %v214_v19 = vadd.f32 %v212_v45, %v210_v46 }
 0x14c   :  { %v360_v54 = vpop.eup %359  ;;  %v239_v55 = vadd.f32 %v237_v49, %v235_v50  ;;  %v236_v60 = vmul.f32 %v234_v51, %v230_v56 }
 0x14d   :  { %v261_v58 = vadd.f32 %v258_v53, %v438_v16  ;;  %v260_v59 = vmul.f32 0.6931472, %v360_v54  ;;  %v238_v31 = vsub.f32 %v174_v52, %v214_v19 }
 0x14e   :  { %v267_v7 = vsel %vm266_vm1, %v239_v55, 0.0 }
 0x14f   :  { %v262_v62 = vadd.f32 %v260_v59, %v450_v26  ;;  %v240_v63 = vadd.f32 %v238_v31, %v236_v60  ;;  %v263_v3 = vsub.f32 %v261_v58, %v132_v57 }
 0x151   :  { %v268_v1 = vsel %vm266_vm1, %v240_v63, 0.0  ;;  %v264_v4 = vsub.f32 %v262_v62, %v133_v61  ;;  %v283_v9 = vsel %vm266_vm1, %v263_v3, 0.0 }
 0x152   :  { %v269_v8 = vadd.f32 %v268_v1, %v267_v7 }
 0x153   :  { %v284_v12 = vsel %vm266_vm1, %v264_v4, 0.0 }
 0x154   :  { %270 = vadd.xlane.f32.xlu0 %v269_v8  ;;  %v285_v16 = vadd.f32 %v284_v12, %v283_v9 }
 0x156   :  { %286 = vadd.xlane.f32.xlu1 %v285_v16 }
 0x1e1   :  { %v271_v13 = vpop.xlane.xlu0 %270 }
 0x1e2   :  { %v272_v0 = vrot.slane %v271_v13, 4 }
 0x1e3   :  { %v287_v2 = vpop.xlane.xlu1 %286 }
 0x1e4   :  { %v273_v14 = vadd.f32 %v272_v0, %v271_v13  ;;  %v288_v15 = vrot.slane %v287_v2, 4 }
 0x1e6   :  { %v274_v17 = vrot.slane %v273_v14, 2  ;;  %v289_v18 = vadd.f32 %v288_v15, %v287_v2 }
 0x1e8   :  { %v290_v6 = vrot.slane %v289_v18, 2  ;;  %v275_v26 = vadd.f32 %v274_v17, %v273_v14 }
 0x1ea   :  { %v291_v11 = vadd.f32 %v290_v6, %v289_v18  ;;  %v276_v20 = vrot.slane %v275_v26, 1 }
 0x1ec   :  { %v277_v21 = vadd.f32 %v276_v20, %v275_v26  ;;  %v292_v22 = vrot.slane %v291_v11, 1 }
 0x1ee   :  { %324 = vpush %v277_v21  ;;  %v293_v23 = vadd.f32 %v292_v22, %v291_v11 }
 0x1f0   :  { %326 = vpush %v293_v23 }
 0x21f   :  { %s325_s2 = spop %324 }
 0x220   :  { %v279_v24 = vstv %s325_s2 }
 0x221   :  { %s327_s7 = spop %326  ;;  %281 = vst [vmem:[%s499_s3] sm:$0xff] %v279_v24 }
 0x222   :  { %v295_v25 = vstv %s327_s7 }
 0x223   :  { %297 = vst [vmem:[%s500_s4] sm:$0xff] %v295_v25 }

</bundles_post_ra>
